<compile_context>
chip_gen: v5e
topology: v5e:2x2
jax: 0.10.0
libtpu: 0.0.40
codegen_flags: <defaults>
</compile_context>

<pallas_src>
import jax
import jax.numpy as jnp
from jax.experimental import pallas as pl
from jax.experimental.pallas import tpu as pltpu

_LANES = 128
_MIN_STEPS = 8  # target >= this many grid steps (pipelining + v7x megacore)


def _round_up(x, m):
    return ((x + m - 1) // m) * m


def _target_block_bytes():
    # Bigger blocks on v7x (~3.2 TB/s HBM) to amortize per-step overhead;
    # 2 MiB elsewhere so 2 bufs x (in + out) fits v5e's 16 MiB scoped-VMEM default.
    try:
        kind = jax.devices()[0].device_kind.lower()
    except Exception:
        kind = ""
    if "7" in kind:
        return 4 * 1024 * 1024
    return 2 * 1024 * 1024


def _prox_linf_kernel(r_ref, p_ref, o_ref):
    # r_ref: SMEM (1,) float32 scalar; p_ref/o_ref: VMEM (tile_rows, 128), native dtype.
    p = p_ref[...]
    r = r_ref[0].astype(p.dtype)
    zero = jnp.zeros((), p.dtype)
    m1 = jnp.maximum(p - r, zero)      # max(p - r, 0)
    m2 = jnp.maximum(-p - r, zero)     # max(-p - r, 0)
    o_ref[...] = p - (m1 - m2)         # exact module formula (valid for any r)


def _prox_formula(p, r):
    r = jnp.asarray(r, p.dtype)
    zero = jnp.zeros((), p.dtype)
    return p - (jnp.maximum(p - r, zero) - jnp.maximum(-p - r, zero))


@jax.jit
def proximal_linf_ball(p, r):
    """Elementwise prox of the L-inf ball: p - (max(p-r,0) - max(-p-r,0)).

    p: float array of any shape (e.g. NCHW). r: scalar. Same shape/dtype out.
    """
    orig_shape = p.shape
    dtype = p.dtype
    n = p.size
    itemsize = jnp.dtype(dtype).itemsize

    flat = p.reshape(-1)
    n_aligned = (n // _LANES) * _LANES

    if n_aligned == 0:
        # tiny tensor (< 128 elements): a kernel launch is pure overhead
        return _prox_formula(flat, r).reshape(orig_shape)

    rows = n_aligned // _LANES
    x2d = flat[:n_aligned].reshape(rows, _LANES)

    # dtype-aware sublane packing (8 for f32, 16 for bf16, 32 for int8/fp8)
    sublane = max(8, 32 // itemsize)
    target_rows = max(sublane, _target_block_bytes() // (_LANES * itemsize))
    target_rows = (target_rows // sublane) * sublane

    # never collapse to one grid step unless the array itself is tiny
    tile_rows = min(target_rows, _round_up(pl.cdiv(rows, _MIN_STEPS), sublane))
    tile_rows = max(tile_rows, sublane)
    if tile_rows > rows:
        tile_rows = rows  # full-extent block only for very small arrays

    grid = (pl.cdiv(rows, tile_rows),)  # partial last block handled by Pallas
    r_arr = jnp.asarray(r, jnp.float32).reshape(1)

    out2d = pl.pallas_call(
        _prox_linf_kernel,
        out_shape=jax.ShapeDtypeStruct((rows, _LANES), dtype),
        grid=grid,
        in_specs=[
            pl.BlockSpec(memory_space=pltpu.SMEM),                  # r scalar
            pl.BlockSpec((tile_rows, _LANES), lambda i: (i, 0)),    # p tile
        ],
        out_specs=pl.BlockSpec((tile_rows, _LANES), lambda i: (i, 0)),
        compiler_params=pltpu.CompilerParams(
            dimension_semantics=("parallel",)),                     # megacore sharding
        cost_estimate=pl.CostEstimate(
            flops=6 * n_aligned,
            transcendentals=0,
            bytes_accessed=2 * n_aligned * itemsize),
    )(r_arr, x2d)

    out_flat = out2d.reshape(-1)
    if n_aligned != n:
        tail = _prox_formula(flat[n_aligned:], r)   # <= 127 elements
        out_flat = jnp.concatenate([out_flat, tail])
    return out_flat.reshape(orig_shape)


if __name__ == "__main__":
    key = jax.random.PRNGKey(0)

    # NCHW input consistent with a conv-style primal variable (aligned path)
    x = jax.random.normal(key, (2, 4, 16, 16), dtype=jnp.float32) * 2.0
    r = 0.5
    y = jax.block_until_ready(proximal_linf_ball(x, r))
    ref = x - (jnp.maximum(x - r, 0.0) - jnp.maximum(-x - r, 0.0))
    assert y.shape == x.shape and y.dtype == x.dtype
    assert jnp.allclose(y, ref, atol=1e-6), "mismatch vs reference (aligned path)"

    # unaligned element count with an aligned prefix (kernel + jnp tail path)
    x2 = jax.random.normal(jax.random.PRNGKey(1), (5, 131), dtype=jnp.float32) * 3.0
    y2 = jax.block_until_ready(proximal_linf_ball(x2, 1.25))
    ref2 = x2 - (jnp.maximum(x2 - 1.25, 0.0) - jnp.maximum(-x2 - 1.25, 0.0))
    assert y2.shape == x2.shape and jnp.allclose(y2, ref2, atol=1e-6)

    # tiny (<128 elems) pure-jnp fallback
    x3 = jax.random.normal(jax.random.PRNGKey(2), (3, 5, 7), dtype=jnp.float32) * 3.0
    y3 = jax.block_until_ready(proximal_linf_ball(x3, 0.75))
    ref3 = x3 - (jnp.maximum(x3 - 0.75, 0.0) - jnp.maximum(-x3 - 0.75, 0.0))
    assert jnp.allclose(y3, ref3, atol=1e-6)

    # bf16 native-dtype path (sublane packing = 16)
    xb = (jax.random.normal(jax.random.PRNGKey(3), (16, 256)) * 2.0).astype(jnp.bfloat16)
    rb = jnp.asarray(0.5, jnp.bfloat16)
    yb = jax.block_until_ready(proximal_linf_ball(xb, 0.5))
    refb = xb - (jnp.maximum(xb - rb, 0) - jnp.maximum(-xb - rb, 0))
    assert yb.dtype == jnp.bfloat16
    assert jnp.allclose(yb.astype(jnp.float32), refb.astype(jnp.float32), atol=1e-2)

    print("KERNEL_OK")
</pallas_src>

<mosaic_0001>
module attributes {stable_mosaic.version = 11 : i64} {
  func.func @_prox_linf_kernel(%arg0: i32, %arg1: memref<1xf32, #tpu.memory_space<smem>>, %arg2: memref<8x128xf32, #tpu.memory_space<vmem>>, %arg3: memref<8x128xf32, #tpu.memory_space<vmem>>) attributes {dimension_semantics = [#tpu.dimension_semantics<parallel>], iteration_bounds = array<i64: 2>, scalar_prefetch = 0 : i64, scratch_operands = 0 : i64, tpu.core_type = #tpu.core_type<tc>, window_params = [{transform_indices = @transform_0, window_bounds = array<i64: 1>}, {transform_indices = @transform_1, window_bounds = array<i64: 8, 128>}, {transform_indices = @transform_2, window_bounds = array<i64: 8, 128>}]} {
    %c0 = arith.constant 0 : index
    %c0_0 = arith.constant 0 : index
    %0 = vector.load %arg2[%c0, %c0_0] : memref<8x128xf32, #tpu.memory_space<vmem>>, vector<8x128xf32>
    %c0_1 = arith.constant 0 : index
    %1 = memref.load %arg1[%c0_1] : memref<1xf32, #tpu.memory_space<smem>>
    %2 = vector.broadcast %1 : f32 to vector<8x128xf32>
    %3 = arith.subf %0, %2 : vector<8x128xf32>
    %cst = arith.constant 0.000000e+00 : f32
    %4 = vector.broadcast %cst : f32 to vector<8x128xf32>
    %5 = arith.maximumf %3, %4 : vector<8x128xf32>
    %cst_2 = arith.constant 0.000000e+00 : f32
    %6 = vector.broadcast %cst_2 : f32 to vector<8x128xf32>
    %7 = arith.subf %6, %0 : vector<8x128xf32>
    %8 = vector.broadcast %1 : f32 to vector<8x128xf32>
    %9 = arith.subf %7, %8 : vector<8x128xf32>
    %cst_3 = arith.constant 0.000000e+00 : f32
    %10 = vector.broadcast %cst_3 : f32 to vector<8x128xf32>
    %11 = arith.maximumf %9, %10 : vector<8x128xf32>
    %12 = arith.subf %5, %11 : vector<8x128xf32>
    %13 = arith.subf %0, %12 : vector<8x128xf32>
    %c0_4 = arith.constant 0 : index
    %c0_5 = arith.constant 0 : index
    %14 = vector.load %arg3[%c0_4, %c0_5] : memref<8x128xf32, #tpu.memory_space<vmem>>, vector<8x128xf32>
    tpu.vector_store %arg3[%c0_4, %c0_5], %13 {strides = array<i32>} : memref<8x128xf32, #tpu.memory_space<vmem>>, vector<8x128xf32>,
    return
  }
  func.func @transform_0(%arg0: i32) -> i32 {
    %c0_i32 = arith.constant 0 : i32
    %c0_i32_0 = arith.constant 0 : i32
    return %c0_i32 : i32
  }
  func.func @transform_1(%arg0: i32) -> (i32, i32) {
    %c0_i32 = arith.constant 0 : i32
    %c0_i32_0 = arith.constant 0 : i32
    return %arg0, %c0_i32 : i32, i32
  }
  func.func @transform_2(%arg0: i32) -> (i32, i32) {
    %c0_i32 = arith.constant 0 : i32
    %c0_i32_0 = arith.constant 0 : i32
    return %arg0, %c0_i32 : i32, i32
  }
}

</mosaic_0001>

<bundles_post_ra>
// kernel: proximal_linf_ball.1
= control target key start
LH: loop header
LB: loop body
LE: loop exit
PB: predicated region body
PF: predicated region fallthrough
CT: control target
= control target key end

     0   :  { %s225_s11 = smov 0   ;;  %s253_s0 = inlined_call_operand.<no memory space> [shape: f32[1], index: 0, kind: input, shape index: {}]   ;;  %s254_s1 = inlined_call_operand.vmem [shape: f32[16,128], index: 1, kind: input, shape index: {}]   ;;  %s255_s2 = inlined_call_operand.vmem [shape: f32[16,128], index: 2, kind: output, shape index: {}]  }
   0x1   :  { %7 = sst [smem:[#allocation2]] %s253_s0 }
   0x2 LB: > { %s204_s12 = sadd.s32 4294967295, %s227_s11   ;;  %p208_p0 = scmp.ge.s32.totalorder %s227_s11, 1  ;;  %s227_s11 = sphi %s225_s11, %s13_s11  }
   0x3   : > { %p112_p1 = scmp.lt.s32.totalorder %s227_s11, 3 }
   0x5   : > { %p113_p2 = pnand %p208_p0, %p112_p1 }
   0x6   : > { %p132_p3 = scmp.lt.s32.totalorder (!%p113_p2), %s204_s12, 1  ;;  %s141_s13 = sld [smem:[#allocation2]] (!%p113_p2) }
   0x7   : > { %116 = sbr.rel (%p113_p2) target bundleno = 27 (0x1b), region = 28 }
   0xc   : > { %s257_s12 = smov (!%p132_p3, %s204_s12), 1  ;;  %v142_v1 = vstv %s141_s13 }
   0xd   : > { %s209_s14 = sshll.u32 %s257_s12, 3 }
   0xe   : > { %s135_s17 = scalar_lea.vmem %s254_s1, %s209_s14  ;;  %s139_s19 = scalar_lea.vmem %s255_s2, %s209_s14 }
   0xf   : > { %v140_v0 = vld [vmem:[%s135_s17] sm:$0xff] }
  0x10   : > { %v143_v2 = vsub.f32 %v140_v0, %v142_v1  ;;  %v145_v3 = vsub.f32 0.0, %v140_v0 }
  0x12   : > { %v144_v4 = vmax.f32 %v143_v2, 0.0  ;;  %v146_v5 = vsub.f32 %v145_v3, %v142_v1 }
  0x14   : > { %v147_v6 = vmax.f32 %v146_v5, 0.0 }
  0x16   : > { %v148_v7 = vsub.f32 %v144_v4, %v147_v6 }
  0x18   : > { %v149_v8 = vsub.f32 %v140_v0, %v148_v7 }
  0x1a   : > { %150 = vst [vmem:[%s139_s19] sm:$0xff] %v149_v8 }
  0x1b PF: > { %s13_s11 = sadd.s32 1, %s227_s11  }
  0x1c   : > { %p10_p4 = scmp.ge.s32.totalorder %s13_s11, 4  }
  0x1e   :  { %12 = sbr.rel (!%p10_p4) target bundleno = 2 (0x2), region = 58 }

</bundles_post_ra>
